<compile_context>
chip_gen: v6e
topology: v6e:2x2x1
jax: 0.10.0
libtpu: 0.0.40
codegen_flags: <defaults>
</compile_context>

<pallas_src>
import jax
import jax.numpy as jnp
from jax.experimental import pallas as pl
from jax.experimental.pallas import tpu as pltpu

H1 = 128   # layer1 out
H2 = 32    # layer2 out
H3 = 1     # layer3 out


def mlp_kernel(x_ref, w1_ref, b1_ref, w2_ref, b2_ref, w3t_ref, b3_ref, o_ref):
    # In-kernel cast to bf16 (no-op if x already arrives as bf16): the f32 HBM
    # stream is read exactly once and the MXU runs at bf16 rate.
    x = x_ref[...].astype(jnp.bfloat16)
    # layer 1: bf16 MXU matmul, f32 accumulate, bias + ReLU on the VPU in f32
    h1 = jnp.dot(x, w1_ref[...], preferred_element_type=jnp.float32)
    h1 = jnp.maximum(h1 + b1_ref[...], 0.0)
    # layer 2: cast the f32 activations to bf16 so the MXU runs at bf16 rate
    h2 = jnp.dot(h1.astype(jnp.bfloat16), w2_ref[...],
                 preferred_element_type=jnp.float32)
    h2 = jnp.maximum(h2 + b2_ref[...], 0.0)
    # layer 3 (K=32, N=1): keep it off the MXU — VPU multiply + XLU lane-reduce.
    # w3t_ref is the (1, 32) row vector.
    h3 = jnp.sum(h2 * w3t_ref[...], axis=-1, keepdims=True) + b3_ref[...]
    o_ref[...] = h3.astype(o_ref.dtype)


def _pick_batch_tile(B, want):
    """Large tiles amortize the ~0.35us/grid-step overhead, but keep >=2 grid
    steps (v7x megacore) and 16-row sublane alignment for the x tile."""
    bt = min(want, B)
    if bt == B and B % 32 == 0:
        bt = B // 2
    while bt > 16 and (B % bt or bt % 16):
        bt -= 16
    if B % bt or bt % 16:
        bt = B  # single full-batch step; block == full array is always legal
    return bt


def mlp_forward(x, params, *, batch_tile=512):
    """x: (B, n_inputs) float32 or bfloat16. params: w1,b1,w2,b2,w3,b3 with
    w's stored as (in_features, out_features). Returns (B, 1) float32."""
    B, n_inputs = x.shape
    bt = _pick_batch_tile(B, batch_tile)
    grid = (B // bt,)

    # Weights in bf16 (tiny, resident); biases and the layer-3 row stay f32.
    # x is passed as-is; the kernel casts it (cheaper than a wrapper cast).
    w1 = params["w1"].astype(jnp.bfloat16)
    w2 = params["w2"].astype(jnp.bfloat16)
    b1 = params["b1"].astype(jnp.float32)
    b2 = params["b2"].astype(jnp.float32)
    w3t = params["w3"].astype(jnp.float32).reshape(1, H2)   # (32,1) -> (1,32)
    b3 = params["b3"].astype(jnp.float32).reshape(1, H3)

    # Small weights / biases: full (un-tiled) blocks with a constant index_map.
    full = lambda shape: pl.BlockSpec(shape, lambda i: (0, 0))

    return pl.pallas_call(
        mlp_kernel,
        out_shape=jax.ShapeDtypeStruct((B, H3), jnp.float32),
        grid_spec=pltpu.PrefetchScalarGridSpec(
            num_scalar_prefetch=0,
            grid=grid,
            in_specs=[
                pl.BlockSpec((bt, n_inputs), lambda i: (i, 0)),  # x tile
                full((n_inputs, H1)), full((1, H1)),             # layer1
                full((H1, H2)),       full((1, H2)),             # layer2
                full((1, H2)),        full((1, H3)),             # layer3 (row)
            ],
            out_specs=pl.BlockSpec((bt, H3), lambda i: (i, 0)),
        ),
        compiler_params=pltpu.CompilerParams(
            dimension_semantics=("parallel",),
            vmem_limit_bytes=40 * 1024 * 1024,
        ),
    )(x, w1, b1, w2, b2, w3t, b3)


def init_params(key, n_inputs):
    """Deterministic init matching the torch module's parameter shapes.
    torch Linear weight is (out, in); we store the transpose (in, out)."""
    ks = jax.random.split(key, 6)

    def lin(kw, kb, fan_in, fan_out):
        bound = 1.0 / jnp.sqrt(fan_in)
        w = jax.random.uniform(kw, (fan_in, fan_out), jnp.float32, -bound, bound)
        b = jax.random.uniform(kb, (1, fan_out), jnp.float32, -bound, bound)
        return w, b

    w1, b1 = lin(ks[0], ks[1], n_inputs, H1)
    w2, b2 = lin(ks[2], ks[3], H1, H2)
    w3, b3 = lin(ks[4], ks[5], H2, H3)
    return dict(w1=w1, b1=b1, w2=w2, b2=b2, w3=w3, b3=b3)


def mlp_ref(x, p):
    h = jnp.maximum(x @ p["w1"] + p["b1"], 0.0)
    h = jnp.maximum(h @ p["w2"] + p["b2"], 0.0)
    return h @ p["w3"] + p["b3"]


if __name__ == "__main__":
    key = jax.random.PRNGKey(0)
    k_x, k_p = jax.random.split(key)

    B, n_inputs = 256, 16           # small test: 2 grid steps of 128 rows each
    x = jax.random.normal(k_x, (B, n_inputs), jnp.float32)
    params = init_params(k_p, n_inputs)

    out = mlp_forward(x, params)
    out = jax.block_until_ready(out)

    ref = mlp_ref(x, params)        # pure f32 reference
    assert out.shape == (B, 1)
    # bf16 matmul inputs (f32 accumulation) -> loosened tolerance vs. f32 ref.
    assert jnp.allclose(out, ref, atol=5e-2, rtol=5e-2), (
        float(jnp.max(jnp.abs(out - ref))))

    print("KERNEL_OK")
</pallas_src>

<mosaic_0001>
module attributes {stable_mosaic.version = 11 : i64} {
  func.func @mlp_kernel(%arg0: i32, %arg1: memref<128x16xf32, #tpu.memory_space<vmem>>, %arg2: memref<16x128xbf16, #tpu.memory_space<vmem>>, %arg3: memref<1x128xf32, #tpu.memory_space<vmem>>, %arg4: memref<128x32xbf16, #tpu.memory_space<vmem>>, %arg5: memref<1x32xf32, #tpu.memory_space<vmem>>, %arg6: memref<1x32xf32, #tpu.memory_space<vmem>>, %arg7: memref<1x1xf32, #tpu.memory_space<vmem>>, %arg8: memref<128x1xf32, #tpu.memory_space<vmem>>) attributes {dimension_semantics = [#tpu.dimension_semantics<parallel>], iteration_bounds = array<i64: 2>, scalar_prefetch = 0 : i64, scratch_operands = 0 : i64, tpu.core_type = #tpu.core_type<tc>, window_params = [{transform_indices = @transform_0, window_bounds = array<i64: 128, 16>}, {pipeline_mode = #tpu.pipeline_mode<synchronous>, transform_indices = @transform_1, window_bounds = array<i64: 16, 128>}, {pipeline_mode = #tpu.pipeline_mode<synchronous>, transform_indices = @transform_2, window_bounds = array<i64: 1, 128>}, {pipeline_mode = #tpu.pipeline_mode<synchronous>, transform_indices = @transform_3, window_bounds = array<i64: 128, 32>}, {pipeline_mode = #tpu.pipeline_mode<synchronous>, transform_indices = @transform_4, window_bounds = array<i64: 1, 32>}, {pipeline_mode = #tpu.pipeline_mode<synchronous>, transform_indices = @transform_5, window_bounds = array<i64: 1, 32>}, {pipeline_mode = #tpu.pipeline_mode<synchronous>, transform_indices = @transform_6, window_bounds = array<i64: 1, 1>}, {transform_indices = @transform_7, window_bounds = array<i64: 128, 1>}]} {
    %c0 = arith.constant 0 : index
    %c0_0 = arith.constant 0 : index
    %0 = vector.load %arg1[%c0, %c0_0] : memref<128x16xf32, #tpu.memory_space<vmem>>, vector<128x16xf32>
    %1 = arith.truncf %0 : vector<128x16xf32> to vector<128x16xbf16>
    %c0_1 = arith.constant 0 : index
    %c0_2 = arith.constant 0 : index
    %2 = vector.load %arg2[%c0_1, %c0_2] : memref<16x128xbf16, #tpu.memory_space<vmem>>, vector<16x128xbf16>
    %cst = arith.constant dense<0.000000e+00> : vector<128x128xf32>
    %3 = tpu.matmul %1, %2, %cst {dimension_numbers = #tpu.dot_dimension_numbers<[1], [0], [0], [1], [0, 0, 1, 1], [], []>} : vector<128x16xbf16>, vector<16x128xbf16>, vector<128x128xf32> -> vector<128x128xf32>
    %c0_3 = arith.constant 0 : index
    %c0_4 = arith.constant 0 : index
    %4 = vector.load %arg3[%c0_3, %c0_4] : memref<1x128xf32, #tpu.memory_space<vmem>>, vector<1x128xf32>
    %5 = vector.broadcast %4 : vector<1x128xf32> to vector<128x128xf32>
    %6 = arith.addf %3, %5 : vector<128x128xf32>
    %cst_5 = arith.constant 0.000000e+00 : f32
    %7 = vector.broadcast %cst_5 : f32 to vector<128x128xf32>
    %8 = arith.maximumf %6, %7 : vector<128x128xf32>
    %9 = arith.truncf %8 : vector<128x128xf32> to vector<128x128xbf16>
    %c0_6 = arith.constant 0 : index
    %c0_7 = arith.constant 0 : index
    %10 = vector.load %arg4[%c0_6, %c0_7] : memref<128x32xbf16, #tpu.memory_space<vmem>>, vector<128x32xbf16>
    %cst_8 = arith.constant dense<0.000000e+00> : vector<128x32xf32>
    %11 = tpu.matmul %9, %10, %cst_8 {dimension_numbers = #tpu.dot_dimension_numbers<[1], [0], [0], [1], [0, 0, 1, 1], [], []>} : vector<128x128xbf16>, vector<128x32xbf16>, vector<128x32xf32> -> vector<128x32xf32>
    %c0_9 = arith.constant 0 : index
    %c0_10 = arith.constant 0 : index
    %12 = vector.load %arg5[%c0_9, %c0_10] : memref<1x32xf32, #tpu.memory_space<vmem>>, vector<1x32xf32>
    %13 = vector.broadcast %12 : vector<1x32xf32> to vector<128x32xf32>
    %14 = arith.addf %11, %13 : vector<128x32xf32>
    %cst_11 = arith.constant 0.000000e+00 : f32
    %15 = vector.broadcast %cst_11 : f32 to vector<128x32xf32>
    %16 = arith.maximumf %14, %15 : vector<128x32xf32>
    %c0_12 = arith.constant 0 : index
    %c0_13 = arith.constant 0 : index
    %17 = vector.load %arg6[%c0_12, %c0_13] : memref<1x32xf32, #tpu.memory_space<vmem>>, vector<1x32xf32>
    %18 = vector.broadcast %17 : vector<1x32xf32> to vector<128x32xf32>
    %19 = arith.mulf %16, %18 : vector<128x32xf32>
    %cst_14 = arith.constant dense<0.000000e+00> : vector<128xf32>
    %20 = vector.multi_reduction <add>, %19, %cst_14 [1] : vector<128x32xf32> to vector<128xf32>
    %21 = vector.shape_cast %20 : vector<128xf32> to vector<128x1xf32>
    %c0_15 = arith.constant 0 : index
    %c0_16 = arith.constant 0 : index
    %22 = vector.load %arg7[%c0_15, %c0_16] : memref<1x1xf32, #tpu.memory_space<vmem>>, vector<1x1xf32>
    %23 = vector.broadcast %22 : vector<1x1xf32> to vector<128x1xf32>
    %24 = arith.addf %21, %23 : vector<128x1xf32>
    %c0_17 = arith.constant 0 : index
    %c0_18 = arith.constant 0 : index
    %25 = vector.load %arg8[%c0_17, %c0_18] : memref<128x1xf32, #tpu.memory_space<vmem>>, vector<128x1xf32>
    tpu.vector_store %arg8[%c0_17, %c0_18], %24 {strides = array<i32>} : memref<128x1xf32, #tpu.memory_space<vmem>>, vector<128x1xf32>,
    return
  }
  func.func @transform_0(%arg0: i32) -> (i32, i32) {
    %c0_i32 = arith.constant 0 : i32
    %c0_i32_0 = arith.constant 0 : i32
    return %arg0, %c0_i32 : i32, i32
  }
  func.func @transform_1(%arg0: i32) -> (i32, i32) {
    %c0_i32 = arith.constant 0 : i32
    %c0_i32_0 = arith.constant 0 : i32
    %c0_i32_1 = arith.constant 0 : i32
    return %c0_i32, %c0_i32_0 : i32, i32
  }
  func.func @transform_2(%arg0: i32) -> (i32, i32) {
    %c0_i32 = arith.constant 0 : i32
    %c0_i32_0 = arith.constant 0 : i32
    %c0_i32_1 = arith.constant 0 : i32
    return %c0_i32, %c0_i32_0 : i32, i32
  }
  func.func @transform_3(%arg0: i32) -> (i32, i32) {
    %c0_i32 = arith.constant 0 : i32
    %c0_i32_0 = arith.constant 0 : i32
    %c0_i32_1 = arith.constant 0 : i32
    return %c0_i32, %c0_i32_0 : i32, i32
  }
  func.func @transform_4(%arg0: i32) -> (i32, i32) {
    %c0_i32 = arith.constant 0 : i32
    %c0_i32_0 = arith.constant 0 : i32
    %c0_i32_1 = arith.constant 0 : i32
    return %c0_i32, %c0_i32_0 : i32, i32
  }
  func.func @transform_5(%arg0: i32) -> (i32, i32) {
    %c0_i32 = arith.constant 0 : i32
    %c0_i32_0 = arith.constant 0 : i32
    %c0_i32_1 = arith.constant 0 : i32
    return %c0_i32, %c0_i32_0 : i32, i32
  }
  func.func @transform_6(%arg0: i32) -> (i32, i32) {
    %c0_i32 = arith.constant 0 : i32
    %c0_i32_0 = arith.constant 0 : i32
    %c0_i32_1 = arith.constant 0 : i32
    return %c0_i32, %c0_i32_0 : i32, i32
  }
  func.func @transform_7(%arg0: i32) -> (i32, i32) {
    %c0_i32 = arith.constant 0 : i32
    %c0_i32_0 = arith.constant 0 : i32
    return %arg0, %c0_i32 : i32, i32
  }
}

</mosaic_0001>

<bundles_post_ra>
// kernel: tpu_custom_call.1
= control target key start
LH: loop header
LB: loop body
LE: loop exit
PB: predicated region body
PF: predicated region fallthrough
CT: control target
= control target key end

     0   :  { %s1013_s26 = smov 0   ;;  %s1185_s0 = inlined_call_operand.vmem [shape: f32[256,16], index: 0, kind: input, shape index: {}]   ;;  %s1186_s1 = inlined_call_operand.vmem [shape: bf16[16,128], index: 1, kind: input, shape index: {}]   ;;  %s1187_s2 = inlined_call_operand.vmem [shape: f32[1,128], index: 2, kind: input, shape index: {}]   ;;  %s1188_s3 = inlined_call_operand.vmem [shape: bf16[128,32], index: 3, kind: input, shape index: {}]   ;;  %s1189_s4 = inlined_call_operand.vmem [shape: f32[1,32], index: 4, kind: input, shape index: {}]   ;;  %s1190_s5 = inlined_call_operand.vmem [shape: f32[1,32], index: 5, kind: input, shape index: {}]   ;;  %s1191_s6 = inlined_call_operand.<no memory space> [shape: f32[1,1], index: 6, kind: input, shape index: {}]   ;;  %s1192_s7 = inlined_call_operand.vmem [shape: f32[256,1], index: 7, kind: output, shape index: {}]  }
   0x1   :  { %v12_v0 = vstv %s1191_s6 }
   0x2   :  { %13 = vst [vmem:[#allocation2] sm:$0x1] %v12_v0 }
   0x3 LB: > { %s822_s27 = sadd.s32 4294967295, %s968_s26   ;;  %p826_p0 = scmp.ge.s32.totalorder %s968_s26, 1  ;;  %s968_s26 = sphi %s1013_s26, %s19_s26  }
   0x4   : > { %p240_p1 = scmp.lt.s32.totalorder %s968_s26, 3 }
   0x6   : > { %p241_p2 = pnand %p826_p0, %p240_p1 }
   0x7   : > { %s827_s6 = sshll.u32 (!%p241_p2), %s822_s27, 4 }
   0x8   : > { %244 = sbr.rel (%p241_p2) target bundleno = 601 (0x259), region = 48  ;;  %p273_p3 = scmp.lt.s32.totalorder (!%p241_p2), %s827_s6, 31 }
   0xd   : > { %v953_v1 = vld [vmem:[%s1186_s1] sm:$0xff]   ;;  %v954_v2 = vld [vmem:[%s1188_s3 + $0x38] sm:$0xff]   ;;  %s1194_s6 = smov (!%p273_p3, %s827_s6), 31  ;;  %v955_v3 = vld [vmem:[%s1188_s3 + $0x30] sm:$0xff]   ;;  %vm324_vm0 = vcmask 130048   ;;  %vm677_vm1 = vcmask 261120  }
   0xe   : > { %879 = vmatprep.subr.bf16.mxu0 %v953_v1  ;;  %929 = vmatprep.subr.bf16.mxu1 %v954_v2  ;;  %s828_s11 = sshll.u32 %s1194_s6, 3  ;;  %v956_v4 = vld [vmem:[%s1188_s3 + $0x28] sm:$0xff]   ;;  %v957_v16 = vld [vmem:[%s1188_s3 + $0x20] sm:$0xff]   ;;  %v958_v21 = vld [vmem:[%s1188_s3 + $0x18] sm:$0xff]   ;;  %vm749_vm2 = vcmask 7168  }
   0xf   : > { %880 = vmatpush3.bf16.msra.mxu0 %v953_v1  ;;  %937 = vmatpush3.bf16.msra.mxu1 %v954_v2  ;;  %s1038_s14 = scalar_lea.vmem %s1185_s0, %s828_s11  ;;  %v959_v31 = vld [vmem:[%s1188_s3 + $0x10] sm:$0xff]   ;;  %v960_v32 = vld [vmem:[%s1188_s3 + $0x8] sm:$0xff]   ;;  %v961_v33 = vld [vmem:[%s1188_s3] sm:$0xff]  }
  0x10   : > { %897 = vmatprep.subr.bf16.mxu0 %v954_v2  ;;  %930 = vmatprep.subr.bf16.mxu1 %v955_v3  ;;  %v285_v5 = vld [vmem:[%s1038_s14] sm:$0xff]  ;;  %v286_v6 = vld [vmem:[%s1038_s14 + $0x8] sm:$0xff]  ;;  %v287_v7 = vld [vmem:[%s1038_s14 + $0x10] sm:$0xff] }
  0x11   : > { %v301_v8 = vpack.c.bf16 %v286_v6, %v285_v5  ;;  %v288_v9 = vld [vmem:[%s1038_s14 + $0x18] sm:$0xff]  ;;  %v289_v10 = vld [vmem:[%s1038_s14 + $0x20] sm:$0xff]  ;;  %v290_v11 = vld [vmem:[%s1038_s14 + $0x28] sm:$0xff] }
  0x12   : > { %v302_v12 = vpack.c.bf16 %v288_v9, %v287_v7  ;;  %v303_v13 = vpack.c.bf16 %v290_v11, %v289_v10  ;;  %v291_v14 = vld [vmem:[%s1038_s14 + $0x30] sm:$0xff]  ;;  %v292_v15 = vld [vmem:[%s1038_s14 + $0x38] sm:$0xff]  ;;  %v293_v17 = vld [vmem:[%s1038_s14 + $0x40] sm:$0xff] }
  0x13   : > { %938 = vmatpush3.bf16.msra.mxu1 %v955_v3  ;;  %881 = vmatprep.mubr.msk.bf16.mxu0 %vm324_vm0, %v301_v8  ;;  %v294_v18 = vld [vmem:[%s1038_s14 + $0x48] sm:$0xff]  ;;  %v304_v19 = vpack.c.bf16 %v292_v15, %v291_v14  ;;  %v295_v22 = vld [vmem:[%s1038_s14 + $0x50] sm:$0xff]  ;;  %v296_v23 = vld [vmem:[%s1038_s14 + $0x58] sm:$0xff] }
  0x14   : > { %931 = vmatprep.subr.bf16.mxu1 %v956_v4  ;;  %882 = vmatmul.mubr.msk.bf16.vlgmr.msra.gmra.mxu0 %vm324_vm0, %v302_v12  ;;  %v305_v20 = vpack.c.bf16 %v294_v18, %v293_v17  ;;  %v297_v24 = vld [vmem:[%s1038_s14 + $0x60] sm:$0xff]  ;;  %v298_v25 = vld [vmem:[%s1038_s14 + $0x68] sm:$0xff]  ;;  %v306_v26 = vpack.c.bf16 %v296_v23, %v295_v22  ;;  %v299_v28 = vld [vmem:[%s1038_s14 + $0x70] sm:$0xff] }
  0x15   : > { %885 = vmatprep.mubr.msk.bf16.mxu0 %vm324_vm0, %v303_v13  ;;  %898 = vmatpush3.bf16.msra.mxu0 %v954_v2  ;;  %v307_v27 = vpack.c.bf16 %v298_v25, %v297_v24  ;;  %v300_v29 = vld [vmem:[%s1038_s14 + $0x78] sm:$0xff]  ;;  %v831_v36 = vld [vmem:[%s1187_s2] ss:$0 sm:$0xff]  ;;  %s1148_s14 = scalar_lea.vmem %s1192_s7, %s828_s11 }
  0x16   : > { %899 = vmatprep.subr.bf16.mxu0 %v955_v3  ;;  %v308_v30 = vpack.c.bf16 %v300_v29, %v299_v28 }
  0x17   : > { %939 = vmatpush3.bf16.msra.mxu1 %v956_v4 }
  0x18   : > { %932 = vmatprep.subr.bf16.mxu1 %v957_v16 }
  0x19   : > { %900 = vmatpush3.bf16.msra.mxu0 %v955_v3 }
  0x1a   : > { %901 = vmatprep.subr.bf16.mxu0 %v956_v4 }
  0x1b   : > { %940 = vmatpush3.bf16.msra.mxu1 %v957_v16 }
  0x1c   : > { %933 = vmatprep.subr.bf16.mxu1 %v958_v21  ;;  %886 = vmatmul.mubr.msk.bf16.gmra.mxu0 %vm324_vm0, %v304_v19 }
  0x1d   : > { %889 = vmatprep.mubr.msk.bf16.mxu0 %vm324_vm0, %v305_v20  ;;  %902 = vmatpush3.bf16.msra.mxu0 %v956_v4 }
  0x1e   : > { %903 = vmatprep.subr.bf16.mxu0 %v957_v16 }
  0x1f   : > { %941 = vmatpush3.bf16.msra.mxu1 %v958_v21 }
  0x20   : > { %934 = vmatprep.subr.bf16.mxu1 %v959_v31 }
  0x21   : > { %904 = vmatpush3.bf16.msra.mxu0 %v957_v16 }
  0x22   : > { %905 = vmatprep.subr.bf16.mxu0 %v958_v21 }
  0x23   : > { %942 = vmatpush3.bf16.msra.mxu1 %v959_v31 }
  0x24   : > { %890 = vmatmul.mubr.msk.bf16.gmra.mxu0 %vm324_vm0, %v306_v26  ;;  %935 = vmatprep.subr.bf16.mxu1 %v960_v32 }
  0x25   : > { %893 = vmatprep.mubr.msk.bf16.mxu0 %vm324_vm0, %v307_v27  ;;  %906 = vmatpush3.bf16.msra.mxu0 %v958_v21  ;;  %v1088_v27 = vld [vmem:[%s1189_s4] ss:$0 sm:$0xff] }
  0x26   : > { %907 = vmatprep.subr.bf16.mxu0 %v959_v31 }
  0x27   : > { %943 = vmatpush3.bf16.msra.mxu1 %v960_v32 }
  0x28   : > { %936 = vmatprep.subr.bf16.mxu1 %v961_v33 }
  0x29   : > { %908 = vmatpush3.bf16.msra.mxu0 %v959_v31  ;;  %v1094_v31 = vld [vmem:[%s1190_s5] ss:$0 sm:$0xff] }
  0x2a   : > { %909 = vmatprep.subr.bf16.mxu0 %v960_v32 }
  0x2b   : > { %944 = vmatpush3.bf16.msra.mxu1 %v961_v33 }
  0x2c   : > { %894 = vmatmul.mubr.msk.bf16.gmra.mxu0 %vm324_vm0, %v308_v30 }
  0x2d   : > { %910 = vmatpush3.bf16.msra.mxu0 %v960_v32 }
  0x2e   : > { %911 = vmatprep.subr.bf16.mxu0 %v961_v33 }
  0x31   : > { %912 = vmatpush3.bf16.msra.mxu0 %v961_v33 }
  0xd4   : > { %v883_v34 = vpop.f32.mrf.mxu0 }
  0xd5   : > { %v392_v40 = vadd.f32 %v883_v34, %v831_v36 }
  0xd6   : > { %v383_v35 = vpop.f32.mrf.mxu0 }
  0xd7   : > { %v384_v38 = vadd.f32 %v831_v36, %v383_v35  ;;  %v448_v47 = vmax.f32 %v392_v40, 0.0 }
  0xd8   : > { %v884_v37 = vpop.f32.mrf.mxu0 }
  0xd9   : > { %v395_v39 = vadd.f32 %v884_v37, %v831_v36  ;;  %v446_v45 = vmax.f32 %v384_v38, 0.0 }
  0xda   : > { %v386_v41 = vpop.f32.mrf.mxu0 }
  0xdb   : > { %v387_v42 = vadd.f32 %v831_v36, %v386_v41  ;;  %v449_v43 = vmax.f32 %v395_v39, 0.0 }
  0xdc   : > { %v887_v44 = vpop.f32.mrf.mxu0 }
  0xdd   : > { %v447_v46 = vmax.f32 %v387_v42, 0.0  ;;  %v463_v50 = vpack.c.bf16 %v449_v43, %v448_v47  ;;  %v408_v54 = vadd.f32 %v887_v44, %v831_v36 }
  0xde   : > { %v399_v48 = vpop.f32.mrf.mxu0 }
  0xdf   : > { %v462_v49 = vpack.c.bf16 %v447_v46, %v446_v45  ;;  %v400_v52 = vadd.f32 %v831_v36, %v399_v48  ;;  %v452_v61 = vmax.f32 %v408_v54, 0.0 }
  0xe0   : > { %v888_v51 = vpop.f32.mrf.mxu0 }
  0xe1   : > { %v411_v53 = vadd.f32 %v888_v51, %v831_v36  ;;  %913 = vmatprep.mubr.bf16.mxu0 %v462_v49  ;;  %v450_v59 = vmax.f32 %v400_v52, 0.0 }
  0xe2   : > { %v402_v55 = vpop.f32.mrf.mxu0  ;;  %914 = vmatmul.mubr.bf16.vlgmr.msra.gmra.mxu0 %v463_v50 }
  0xe3   : > { %v403_v56 = vadd.f32 %v831_v36, %v402_v55  ;;  %v453_v57 = vmax.f32 %v411_v53, 0.0 }
  0xe4   : > { %v891_v58 = vpop.f32.mrf.mxu0 }
  0xe5   : > { %v451_v60 = vmax.f32 %v403_v56, 0.0  ;;  %v465_v0 = vpack.c.bf16 %v453_v57, %v452_v61  ;;  %v424_v4 = vadd.f32 %v891_v58, %v831_v36 }
  0xe6   : > { %v415_v62 = vpop.f32.mrf.mxu0 }
  0xe7   : > { %v464_v63 = vpack.c.bf16 %v451_v60, %v450_v59  ;;  %v416_v2 = vadd.f32 %v831_v36, %v415_v62  ;;  %v456_v11 = vmax.f32 %v424_v4, 0.0 }
  0xe8   : > { %v892_v1 = vpop.f32.mrf.mxu0 }
  0xe9   : > { %v427_v3 = vadd.f32 %v892_v1, %v831_v36  ;;  %917 = vmatprep.mubr.bf16.mxu1 %v464_v63  ;;  %v454_v9 = vmax.f32 %v416_v2, 0.0 }
  0xea   : > { %v418_v5 = vpop.f32.mrf.mxu0  ;;  %918 = vmatmul.mubr.bf16.vlgmr.msra.gmra.mxu1 %v465_v0 }
  0xeb   : > { %v419_v6 = vadd.f32 %v831_v36, %v418_v5  ;;  %v457_v7 = vmax.f32 %v427_v3, 0.0 }
  0xec   : > { %v895_v8 = vpop.f32.mrf.mxu0 }
  0xed   : > { %v455_v10 = vmax.f32 %v419_v6, 0.0  ;;  %v467_v14 = vpack.c.bf16 %v457_v7, %v456_v11  ;;  %v440_v18 = vadd.f32 %v895_v8, %v831_v36 }
  0xee   : > { %v431_v12 = vpop.f32.mrf.mxu0 }
  0xef   : > { %v466_v13 = vpack.c.bf16 %v455_v10, %v454_v9  ;;  %v432_v16 = vadd.f32 %v831_v36, %v431_v12  ;;  %v460_v24 = vmax.f32 %v440_v18, 0.0 }
  0xf0   : > { %v896_v15 = vpop.f32.mrf.mxu0 }
  0xf1   : > { %v443_v17 = vadd.f32 %v896_v15, %v831_v36  ;;  %921 = vmatprep.mubr.bf16.mxu1 %v466_v13  ;;  %v458_v22 = vmax.f32 %v432_v16, 0.0 }
  0xf2   : > { %v434_v19 = vpop.f32.mrf.mxu0  ;;  %922 = vmatmul.mubr.bf16.gmra.mxu1 %v467_v14 }
  0xf3   : > { %v435_v20 = vadd.f32 %v831_v36, %v434_v19  ;;  %v461_v21 = vmax.f32 %v443_v17, 0.0 }
  0xf5   : > { %v459_v23 = vmax.f32 %v435_v20, 0.0  ;;  %v469_v26 = vpack.c.bf16 %v461_v21, %v460_v24 }
  0xf7   : > { %v468_v25 = vpack.c.bf16 %v459_v23, %v458_v22 }
  0xf9   : > { %925 = vmatprep.mubr.bf16.mxu1 %v468_v25 }
  0xfa   : > { %926 = vmatmul.mubr.bf16.gmra.mxu1 %v469_v26 }
 0x1a2   : > { %v915_v28 = vpop.f32.mrf.mxu0 }
 0x1a3   : > { %v584_v29 = vadd.f32 %v915_v28, %v1088_v27 }
 0x1a4   : > { %v575_v30 = vpop.f32.mrf.mxu0 }
 0x1a5   : > { %v640_v32 = vmax.f32 %v584_v29, 0.0  ;;  %v576_v33 = vadd.f32 %v1088_v27, %v575_v30 }
 0x1a6   : > { %v916_v34 = vpop.f32.mrf.mxu0 }
 0x1a7   : > { %v638_v35 = vmax.f32 %v576_v33, 0.0  ;;  %v587_v36 = vadd.f32 %v916_v34, %v1088_v27  ;;  %v663_v37 = vmul.f32 %v1094_v31, %v640_v32 }
 0x1a8   : > { %v578_v38 = vpop.f32.mrf.mxu0 }
 0x1a9   : > { %v641_v39 = vmax.f32 %v587_v36, 0.0  ;;  %v579_v40 = vadd.f32 %v1088_v27, %v578_v38  ;;  %v684_v41 = vsel %vm677_vm1, %v663_v37, 0.0  ;;  %v661_v42 = vmul.f32 %v1094_v31, %v638_v35 }
 0x1aa   : > { %v919_v43 = vpop.f32.mrf.mxu1  ;;  %685 = vadd.xlane.f32.xlu1 %v684_v41 }
 0x1ab   : > { %v639_v44 = vmax.f32 %v579_v40, 0.0  ;;  %v600_v45 = vadd.f32 %v919_v43, %v1088_v27  ;;  %v678_v46 = vsel %vm677_vm1, %v661_v42, 0.0  ;;  %v664_v47 = vmul.f32 %v1094_v31, %v641_v39 }
 0x1ac   : > { %v591_v48 = vpop.f32.mrf.mxu1  ;;  %679 = vadd.xlane.f32.xlu0 %v678_v46  ;;  %v851_v46 = vld [vmem:[#allocation2] ss:$0 sm:$0xff] }
 0x1ad   : > { %v644_v49 = vmax.f32 %v600_v45, 0.0  ;;  %v592_v50 = vadd.f32 %v1088_v27, %v591_v48  ;;  %v687_v51 = vsel %vm677_vm1, %v664_v47, 0.0  ;;  %v662_v52 = vmul.f32 %v1094_v31, %v639_v44 }
 0x1ae   : > { %v920_v53 = vpop.f32.mrf.mxu1  ;;  %688 = vadd.xlane.f32.xlu1 %v687_v51 }
 0x1af   : > { %v642_v54 = vmax.f32 %v592_v50, 0.0  ;;  %v603_v55 = vadd.f32 %v920_v53, %v1088_v27  ;;  %v681_v56 = vsel %vm677_vm1, %v662_v52, 0.0  ;;  %v667_v57 = vmul.f32 %v1094_v31, %v644_v49 }
 0x1b0   : > { %v594_v58 = vpop.f32.mrf.mxu1  ;;  %682 = vadd.xlane.f32.xlu0 %v681_v56 }
 0x1b1   : > { %v645_v59 = vmax.f32 %v603_v55, 0.0  ;;  %v595_v60 = vadd.f32 %v1088_v27, %v594_v58  ;;  %v696_v62 = vsel %vm677_vm1, %v667_v57, 0.0  ;;  %v665_v2 = vmul.f32 %v1094_v31, %v642_v54 }
 0x1b2   : > { %v923_v61 = vpop.f32.mrf.mxu1 }
 0x1b3   : > { %v643_v63 = vmax.f32 %v595_v60, 0.0  ;;  %v616_v0 = vadd.f32 %v923_v61, %v1088_v27  ;;  %v668_v1 = vmul.f32 %v1094_v31, %v645_v59  ;;  %v690_v11 = vsel %vm677_vm1, %v665_v2, 0.0 }
 0x1b4   : > { %v607_v3 = vpop.f32.mrf.mxu1  ;;  %697 = vadd.xlane.f32.xlu0 %v696_v62 }
 0x1b5   : > { %v648_v4 = vmax.f32 %v616_v0, 0.0  ;;  %v608_v5 = vadd.f32 %v1088_v27, %v607_v3  ;;  %v699_v6 = vsel %vm677_vm1, %v668_v1, 0.0  ;;  %v666_v7 = vmul.f32 %v1094_v31, %v643_v63 }
 0x1b6   : > { %v924_v8 = vpop.f32.mrf.mxu1  ;;  %700 = vadd.xlane.f32.xlu1 %v699_v6 }
 0x1b7   : > { %v646_v9 = vmax.f32 %v608_v5, 0.0  ;;  %v619_v10 = vadd.f32 %v924_v8, %v1088_v27  ;;  %v671_v12 = vmul.f32 %v1094_v31, %v648_v4  ;;  %v693_v16 = vsel %vm677_vm1, %v666_v7, 0.0 }
 0x1b8   : > { %v610_v13 = vpop.f32.mrf.mxu1  ;;  %691 = vadd.xlane.f32.xlu0 %v690_v11 }
 0x1b9   : > { %v649_v14 = vmax.f32 %v619_v10, 0.0  ;;  %v611_v15 = vadd.f32 %v1088_v27, %v610_v13  ;;  %v708_v18 = vsel %vm677_vm1, %v671_v12, 0.0  ;;  %v669_v22 = vmul.f32 %v1094_v31, %v646_v9 }
 0x1ba   : > { %v927_v17 = vpop.f32.mrf.mxu1  ;;  %694 = vadd.xlane.f32.xlu1 %v693_v16 }
 0x1bb   : > { %v647_v19 = vmax.f32 %v611_v15, 0.0  ;;  %v632_v20 = vadd.f32 %v927_v17, %v1088_v27  ;;  %v672_v21 = vmul.f32 %v1094_v31, %v649_v14  ;;  %v702_v33 = vsel %vm677_vm1, %v669_v22, 0.0 }
 0x1bc   : > { %v623_v23 = vpop.f32.mrf.mxu1  ;;  %709 = vadd.xlane.f32.xlu0 %v708_v18 }
 0x1bd   : > { %v624_v24 = vadd.f32 %v1088_v27, %v623_v23  ;;  %v711_v25 = vsel %vm677_vm1, %v672_v21, 0.0  ;;  %v670_v26 = vmul.f32 %v1094_v31, %v647_v19  ;;  %v652_v29 = vmax.f32 %v632_v20, 0.0 }
 0x1be   : > { %v928_v28 = vpop.f32.mrf.mxu1  ;;  %712 = vadd.xlane.f32.xlu1 %v711_v25 }
 0x1bf   : > { %v650_v30 = vmax.f32 %v624_v24, 0.0  ;;  %v635_v32 = vadd.f32 %v928_v28, %v1088_v27  ;;  %v705_v36 = vsel %vm677_vm1, %v670_v26, 0.0  ;;  %v675_v41 = vmul.f32 %v1094_v31, %v652_v29 }
 0x1c0   : > { %v626_v34 = vpop.f32.mrf.mxu1  ;;  %703 = vadd.xlane.f32.xlu0 %v702_v33 }
 0x1c1   : > { %v627_v35 = vadd.f32 %v1088_v27, %v626_v34  ;;  %v673_v37 = vmul.f32 %v1094_v31, %v650_v30  ;;  %v653_v38 = vmax.f32 %v635_v32, 0.0  ;;  %v720_v44 = vsel %vm677_vm1, %v675_v41, 0.0 }
 0x1c2   : > { %706 = vadd.xlane.f32.xlu1 %v705_v36 }
 0x1c3   : > { %v651_v39 = vmax.f32 %v627_v35, 0.0  ;;  %v714_v40 = vsel %vm677_vm1, %v673_v37, 0.0  ;;  %v676_v27 = vmul.f32 %v1094_v31, %v653_v38 }
 0x1c4   : > { %715 = vadd.xlane.f32.xlu0 %v714_v40 }
 0x1c5   : > { %v674_v42 = vmul.f32 %v1094_v31, %v651_v39  ;;  %v723_v45 = vsel %vm677_vm1, %v676_v27, 0.0 }
 0x1c7   : > { %v717_v43 = vsel %vm677_vm1, %v674_v42, 0.0 }
 0x1c8   : > { %718 = vadd.xlane.f32.xlu1 %v717_v43  ;;  %721 = vadd.xlane.f32.xlu0 %v720_v44 }
 0x1cc   : > { %724 = vadd.xlane.f32.xlu1 %v723_v45 }
 0x233   : > { %v686_v47 = vpop.xlane.xlu1 %685 }
 0x234   : > { %v735_v31 = vadd.f32 %v851_v46, %v686_v47 }
 0x235   : > { %v680_v48 = vpop.xlane.xlu0 %679 }
 0x236   : > { %752 = vst.msk [vmem:[%s1148_s14 + $0x10] sm:$0xff] %vm749_vm2, %v735_v31  ;;  %v733_v49 = vadd.f32 %v851_v46, %v680_v48 }
 0x237   : > { %v689_v50 = vpop.xlane.xlu1 %688 }
 0x238   : > { %750 = vst.msk [vmem:[%s1148_s14] sm:$0xff] %vm749_vm2, %v733_v49  ;;  %v736_v51 = vadd.f32 %v851_v46, %v689_v50 }
 0x239   : > { %v683_v52 = vpop.xlane.xlu0 %682 }
 0x23a   : > { %753 = vst.msk [vmem:[%s1148_s14 + $0x18] sm:$0xff] %vm749_vm2, %v736_v51  ;;  %v734_v53 = vadd.f32 %v851_v46, %v683_v52 }
 0x23c   : > { %751 = vst.msk [vmem:[%s1148_s14 + $0x8] sm:$0xff] %vm749_vm2, %v734_v53 }
 0x23d   : > { %v698_v54 = vpop.xlane.xlu0 %697 }
 0x23e   : > { %v739_v55 = vadd.f32 %v851_v46, %v698_v54 }
 0x23f   : > { %v701_v56 = vpop.xlane.xlu1 %700 }
 0x240   : > { %756 = vst.msk [vmem:[%s1148_s14 + $0x30] sm:$0xff] %vm749_vm2, %v739_v55  ;;  %v740_v57 = vadd.f32 %v851_v46, %v701_v56 }
 0x241   : > { %v692_v58 = vpop.xlane.xlu0 %691 }
 0x242   : > { %757 = vst.msk [vmem:[%s1148_s14 + $0x38] sm:$0xff] %vm749_vm2, %v740_v57  ;;  %v737_v59 = vadd.f32 %v851_v46, %v692_v58 }
 0x243   : > { %v695_v60 = vpop.xlane.xlu1 %694 }
 0x244   : > { %754 = vst.msk [vmem:[%s1148_s14 + $0x20] sm:$0xff] %vm749_vm2, %v737_v59  ;;  %v738_v61 = vadd.f32 %v851_v46, %v695_v60 }
 0x245   : > { %v710_v62 = vpop.xlane.xlu0 %709 }
 0x246   : > { %755 = vst.msk [vmem:[%s1148_s14 + $0x28] sm:$0xff] %vm749_vm2, %v738_v61  ;;  %v743_v63 = vadd.f32 %v851_v46, %v710_v62 }
 0x247   : > { %v713_v0 = vpop.xlane.xlu1 %712 }
 0x248   : > { %760 = vst.msk [vmem:[%s1148_s14 + $0x50] sm:$0xff] %vm749_vm2, %v743_v63  ;;  %v744_v1 = vadd.f32 %v851_v46, %v713_v0 }
 0x249   : > { %v704_v2 = vpop.xlane.xlu0 %703 }
 0x24a   : > { %761 = vst.msk [vmem:[%s1148_s14 + $0x58] sm:$0xff] %vm749_vm2, %v744_v1  ;;  %v741_v3 = vadd.f32 %v851_v46, %v704_v2 }
 0x24b   : > { %v707_v4 = vpop.xlane.xlu1 %706 }
 0x24c   : > { %758 = vst.msk [vmem:[%s1148_s14 + $0x40] sm:$0xff] %vm749_vm2, %v741_v3  ;;  %v742_v5 = vadd.f32 %v851_v46, %v707_v4 }
 0x24d   : > { %v716_v6 = vpop.xlane.xlu0 %715 }
 0x24e   : > { %759 = vst.msk [vmem:[%s1148_s14 + $0x48] sm:$0xff] %vm749_vm2, %v742_v5  ;;  %v745_v7 = vadd.f32 %v851_v46, %v716_v6 }
 0x250   : > { %762 = vst.msk [vmem:[%s1148_s14 + $0x60] sm:$0xff] %vm749_vm2, %v745_v7 }
 0x251   : > { %v719_v8 = vpop.xlane.xlu1 %718  ;;  %v722_v9 = vpop.xlane.xlu0 %721 }
 0x252   : > { %v746_v10 = vadd.f32 %v851_v46, %v719_v8  ;;  %v747_v11 = vadd.f32 %v851_v46, %v722_v9 }
 0x254   : > { %763 = vst.msk [vmem:[%s1148_s14 + $0x68] sm:$0xff] %vm749_vm2, %v746_v10  ;;  %764 = vst.msk [vmem:[%s1148_s14 + $0x70] sm:$0xff] %vm749_vm2, %v747_v11 }
 0x255   : > { %v725_v12 = vpop.xlane.xlu1 %724 }
 0x256   : > { %v748_v13 = vadd.f32 %v851_v46, %v725_v12 }
 0x258   : > { %765 = vst.msk [vmem:[%s1148_s14 + $0x78] sm:$0xff] %vm749_vm2, %v748_v13 }
 0x259 PF: > { %s19_s26 = sadd.s32 1, %s968_s26  }
 0x25a   : > { %p16_p4 = scmp.ge.s32.totalorder %s19_s26, 4  }
 0x25c   :  { %18 = sbr.rel (!%p16_p4) target bundleno = 3 (0x3), region = 78 }

</bundles_post_ra>
